<compile_context>
chip_gen: v5e
topology: v5e:2x2
jax: 0.10.0
libtpu: 0.0.40
codegen_flags: <defaults>
</compile_context>

<pallas_src>
import functools

import jax
import jax.numpy as jnp
from jax import lax
from jax.experimental import pallas as pl
from jax.experimental.pallas import tpu as pltpu


# Batched matmul dimension_numbers (batch axis 0):
_GRAM_DN = (((2,), (2,)), ((0,), (0,)))   # 'bcn,bdn->bcd'
_AV_DN = (((2,), (1,)), ((0,), (0,)))     # 'bcd,bdn->bcn'


def _roundup(x, m):
    return -(-x // m) * m


def _softmax_last(z):
    m = jnp.max(z, axis=-1, keepdims=True)
    e = jnp.exp(z - m)
    s = jnp.sum(e, axis=-1, keepdims=True)
    # reciprocal goes to the EUP slot instead of a VALU divide
    return e * pl.reciprocal(s, approx=True)


def attention_kernel(x_ref, c_ref, o_ref, *, scale, flat_out):
    x_nat = x_ref[...]                       # (tb, C, N), native dtype (MXU operand)
    tb, C, N = x_nat.shape

    # w1 = softmax(scale * x @ x^T): batched Gram, contraction over N.
    # NOTE: the Gram contracts the lane dim of both operands; if a bundle dump
    # ever shows a per-batch vxpose here, materialize a (tb, N, C) view once
    # per block instead.  The kernel is DMA-bound, so this is secondary.
    w1 = lax.dot_general(x_nat, x_nat, _GRAM_DN,
                         preferred_element_type=jnp.float32) * scale
    w1 = _softmax_last(w1)

    # w2 = softmax(scale * sigmoid(c) @ sigmoid(c)^T), kept in f32 end-to-end.
    cs = jax.nn.sigmoid(c_ref[...].astype(jnp.float32))
    w2 = lax.dot_general(cs, cs, _GRAM_DN,
                         preferred_element_type=jnp.float32) * scale
    w2 = _softmax_last(w2)

    # y = (w1 + w2) @ x ; out = x + y.  The f32 copy of x exists only for this
    # tail (AV matmul + residual), not across the Grams and softmaxes.
    w12 = w1 + w2
    x_f32 = x_nat.astype(jnp.float32)
    y = lax.dot_general(w12, x_f32, _AV_DN,
                        preferred_element_type=jnp.float32)
    out = (x_f32 + y).astype(o_ref.dtype)
    if flat_out:
        out = out.reshape(tb, C * N)         # lane-dense writeback
    o_ref[...] = out


def _tpu_vmem_and_cores():
    """(physical VMEM bytes per TensorCore, TensorCores per chip), best effort."""
    phys, cores = 64 << 20, 1                # conservative unknown-chip default
    kind = ""
    try:
        kind = jax.devices()[0].device_kind.lower()
    except Exception:
        pass
    if "v7" in kind:
        phys, cores = 64 << 20, 2
    elif "v6" in kind:
        phys, cores = 128 << 20, 1
    elif "v5 lite" in kind or "v5e" in kind or "v5lite" in kind:
        phys, cores = 128 << 20, 1
    elif "v5" in kind or "v4" in kind:
        phys, cores = 128 << 20, 2           # megacore generations
    try:
        info = pltpu.get_tpu_info()
        phys = int(getattr(info, "vmem_capacity_bytes", phys)) or phys
    except Exception:
        pass
    return phys, cores


def attention(x, condition, condition_dim=32 * 7 * 7, block_batch=None):
    """Pallas port of Attention.forward.

    x, condition: (B, C, H, W) arrays (same shape, square spatial).
    Returns (B, C, H*H), matching the PyTorch module.
    """
    B, C, H, W = condition.shape
    assert x.shape == condition.shape, "x and condition must have the same shape"
    assert H == W, "module semantics require square spatial dims (uses H*H)"
    N = H * H
    # Matches the PyTorch module: scale comes from the constructor default
    # condition_dim, not from the runtime tensor shape.
    scale = float(condition_dim) ** (-0.5)

    dtype = x.dtype
    itemsize = jnp.dtype(dtype).itemsize
    x_r = x.reshape(B, C, N)
    c_r = condition.reshape(B, C, N)

    phys_vmem, n_cores = _tpu_vmem_and_cores()
    # Leave ~25% of physical VMEM for compiler scratch / alignment slop:
    # ~48 MiB on v7x, ~96 MiB on v5e / v6e (well above the scoped defaults).
    vmem_budget = (phys_vmem * 3) // 4

    # --- per-batch VMEM footprint using *padded* (sublane x 128) tiles -------
    sub = max(8, 32 // itemsize)             # 8 f32, 16 bf16, 32 int8
    c_pad = _roundup(C, sub)
    n_pad = _roundup(N, 128)
    in_blk = c_pad * n_pad * itemsize                         # one input, one buffer
    out_blk = max(_roundup(C * N, 128) * itemsize,            # flat (tb, C*N) store
                  c_pad * n_pad * itemsize)                   # 3-D fallback
    f32_cn = _roundup(C, 8) * n_pad * 4                       # one (C, N) f32 temp
    f32_cc = _roundup(C, 8) * _roundup(C, 128) * 4            # one (C, C) f32 temp
    per_batch = (2 * 2 * in_blk              # two inputs, double-buffered
                 + 2 * out_blk               # output, double-buffered
                 + 4 * f32_cn                # cs, x_f32, y, store-side copy
                 + 3 * f32_cc)               # w1, w2, w1+w2
    per_batch = int(per_batch * 1.25) + 1    # relayout / misc headroom
    tb_cap = max(1, int(vmem_budget) // per_batch)

    if block_batch is not None:
        tb = max(1, min(int(block_batch), B))
    else:
        tb = min(tb_cap, B)
        # Enough grid steps for DMA/compute overlap (>=4 per TensorCore on
        # megacore chips, >=2 total otherwise), but never shrink input blocks
        # below ~512 KiB just to add steps.
        min_steps = 4 * n_cores if n_cores >= 2 else 2
        if B >= min_steps:
            tb_steps = -(-B // min_steps)
            tb_floor = max(1, (512 * 1024) // max(1, in_blk))
            tb = min(tb, max(tb_steps, min(tb_floor, tb)))
    tb = max(1, min(tb, B))

    # Lane-dense output only pays when the 3-D store would be masked (N % 128).
    flat_out = (N % 128) != 0
    if flat_out and tb < B and tb % sub != 0:
        if tb > sub:
            tb = (tb // sub) * sub           # keep the (8,128) block rule legal
        else:
            flat_out = False                 # tiny multi-step blocks: 3-D store

    num_blocks = -(-B // tb)
    b_pad = num_blocks * tb
    if b_pad != B:
        pad = b_pad - B
        # zero-padded batches are computed and discarded; softmax of a zero
        # Gram matrix is well defined, so no NaNs leak in.
        x_r = jnp.pad(x_r, ((0, pad), (0, 0), (0, 0)))
        c_r = jnp.pad(c_r, ((0, pad), (0, 0), (0, 0)))

    if flat_out:
        out_shape = jax.ShapeDtypeStruct((b_pad, C * N), dtype)
        out_spec = pl.BlockSpec((tb, C * N), lambda b: (b, 0))
    else:
        out_shape = jax.ShapeDtypeStruct((b_pad, C, N), dtype)
        out_spec = pl.BlockSpec((tb, C, N), lambda b: (b, 0, 0))

    cost = pl.CostEstimate(
        flops=int(6 * b_pad * C * C * N),
        transcendentals=int(b_pad * (C * N + 2 * C * C)),
        bytes_accessed=int(3 * b_pad * C * N * itemsize),
    )

    kernel = functools.partial(attention_kernel, scale=scale, flat_out=flat_out)
    out = pl.pallas_call(
        kernel,
        out_shape=out_shape,
        grid=(num_blocks,),
        in_specs=[
            pl.BlockSpec((tb, C, N), lambda b: (b, 0, 0)),
            pl.BlockSpec((tb, C, N), lambda b: (b, 0, 0)),
        ],
        out_specs=out_spec,
        compiler_params=pltpu.CompilerParams(
            dimension_semantics=("parallel",),
            vmem_limit_bytes=int(vmem_budget),
        ),
        cost_estimate=cost,
    )(x_r, c_r)

    out = out[:B]
    if flat_out:
        out = out.reshape(B, C, N)
    return out


def attention_ref(x, condition, condition_dim=32 * 7 * 7):
    """Pure-JAX reference mirroring the PyTorch forward."""
    B, C, H, W = condition.shape
    N = H * H
    scale = float(condition_dim) ** (-0.5)
    x_r = x.reshape(B, C, N).astype(jnp.float32)
    c_r = condition.reshape(B, C, N).astype(jnp.float32)
    w1 = jnp.einsum("bcn,bdn->bcd", x_r, x_r) * scale
    w1 = jax.nn.softmax(w1, axis=-1)
    cs = jax.nn.sigmoid(c_r)
    w2 = jnp.einsum("bcn,bdn->bcd", cs, cs) * scale
    w2 = jax.nn.softmax(w2, axis=-1)
    y = jnp.einsum("bcd,bdn->bcn", w1 + w2, x_r)
    return (x_r + y).astype(x.dtype)


if __name__ == "__main__":
    # Small, module-consistent shapes: batch=2, channels=4, spatial=8x8.
    key = jax.random.PRNGKey(0)
    kx, kc = jax.random.split(key)
    x = jax.random.normal(kx, (2, 4, 8, 8), dtype=jnp.float32)
    condition = jax.random.normal(kc, (2, 4, 8, 8), dtype=jnp.float32)

    out = attention(x, condition)
    out = jax.block_until_ready(out)

    ref = attention_ref(x, condition)
    assert out.shape == (2, 4, 64), out.shape
    # tolerance leaves headroom for the EUP approximate reciprocal in softmax
    assert jnp.allclose(out, ref, atol=2e-3, rtol=2e-3), "mismatch vs reference"
    print("KERNEL_OK")
</pallas_src>

<mosaic_0001>
module attributes {stable_mosaic.version = 11 : i64} {
  func.func @attention_kernel(%arg0: i32, %arg1: memref<2x4x64xf32, #tpu.memory_space<vmem>>, %arg2: memref<2x4x64xf32, #tpu.memory_space<vmem>>, %arg3: memref<2x256xf32, #tpu.memory_space<vmem>>) attributes {dimension_semantics = [#tpu.dimension_semantics<parallel>], iteration_bounds = array<i64: 1>, scalar_prefetch = 0 : i64, scratch_operands = 0 : i64, tpu.core_type = #tpu.core_type<tc>, window_params = [{transform_indices = @transform_0, window_bounds = array<i64: 2, 4, 64>}, {transform_indices = @transform_1, window_bounds = array<i64: 2, 4, 64>}, {transform_indices = @transform_2, window_bounds = array<i64: 2, 256>}]} {
    %c0 = arith.constant 0 : index
    %c0_0 = arith.constant 0 : index
    %c0_1 = arith.constant 0 : index
    %0 = vector.load %arg1[%c0, %c0_0, %c0_1] : memref<2x4x64xf32, #tpu.memory_space<vmem>>, vector<2x4x64xf32>
    %cst = arith.constant dense<0.000000e+00> : vector<2x4x4xf32>
    %1 = tpu.matmul %0, %0, %cst {dimension_numbers = #tpu.dot_dimension_numbers<[2], [2], [1], [1], [0, 0, 0, 1, 1, 1], [0], [0]>} : vector<2x4x64xf32>, vector<2x4x64xf32>, vector<2x4x4xf32> -> vector<2x4x4xf32>
    %cst_2 = arith.constant 0.0252538137 : f32
    %2 = vector.broadcast %cst_2 : f32 to vector<2x4x4xf32>
    %3 = arith.mulf %1, %2 : vector<2x4x4xf32>
    %cst_3 = arith.constant dense<0xFF800000> : vector<2x4xf32>
    %4 = vector.multi_reduction <maximumf>, %3, %cst_3 [2] : vector<2x4x4xf32> to vector<2x4xf32>
    %5 = vector.shape_cast %4 : vector<2x4xf32> to vector<2x4x1xf32>
    %6 = vector.broadcast %5 : vector<2x4x1xf32> to vector<2x4x4xf32>
    %7 = arith.subf %3, %6 : vector<2x4x4xf32>
    %8 = math.exp %7 : vector<2x4x4xf32>
    %cst_4 = arith.constant dense<0.000000e+00> : vector<2x4xf32>
    %9 = vector.multi_reduction <add>, %8, %cst_4 [2] : vector<2x4x4xf32> to vector<2x4xf32>
    %10 = vector.shape_cast %9 : vector<2x4xf32> to vector<2x4x1xf32>
    %11 = tpu.reciprocal %10 {approx = true} : vector<2x4x1xf32> -> vector<2x4x1xf32>
    %12 = vector.broadcast %11 : vector<2x4x1xf32> to vector<2x4x4xf32>
    %13 = arith.mulf %8, %12 : vector<2x4x4xf32>
    %c0_5 = arith.constant 0 : index
    %c0_6 = arith.constant 0 : index
    %c0_7 = arith.constant 0 : index
    %14 = vector.load %arg2[%c0_5, %c0_6, %c0_7] : memref<2x4x64xf32, #tpu.memory_space<vmem>>, vector<2x4x64xf32>
    %15 = arith.negf %14 : vector<2x4x64xf32>
    %16 = math.exp %15 : vector<2x4x64xf32>
    %cst_8 = arith.constant 1.000000e+00 : f32
    %17 = vector.broadcast %cst_8 : f32 to vector<2x4x64xf32>
    %18 = arith.addf %17, %16 : vector<2x4x64xf32>
    %19 = arith.divf %17, %18 : vector<2x4x64xf32>
    %cst_9 = arith.constant dense<0.000000e+00> : vector<2x4x4xf32>
    %20 = tpu.matmul %19, %19, %cst_9 {dimension_numbers = #tpu.dot_dimension_numbers<[2], [2], [1], [1], [0, 0, 0, 1, 1, 1], [0], [0]>} : vector<2x4x64xf32>, vector<2x4x64xf32>, vector<2x4x4xf32> -> vector<2x4x4xf32>
    %cst_10 = arith.constant 0.0252538137 : f32
    %21 = vector.broadcast %cst_10 : f32 to vector<2x4x4xf32>
    %22 = arith.mulf %20, %21 : vector<2x4x4xf32>
    %cst_11 = arith.constant dense<0xFF800000> : vector<2x4xf32>
    %23 = vector.multi_reduction <maximumf>, %22, %cst_11 [2] : vector<2x4x4xf32> to vector<2x4xf32>
    %24 = vector.shape_cast %23 : vector<2x4xf32> to vector<2x4x1xf32>
    %25 = vector.broadcast %24 : vector<2x4x1xf32> to vector<2x4x4xf32>
    %26 = arith.subf %22, %25 : vector<2x4x4xf32>
    %27 = math.exp %26 : vector<2x4x4xf32>
    %cst_12 = arith.constant dense<0.000000e+00> : vector<2x4xf32>
    %28 = vector.multi_reduction <add>, %27, %cst_12 [2] : vector<2x4x4xf32> to vector<2x4xf32>
    %29 = vector.shape_cast %28 : vector<2x4xf32> to vector<2x4x1xf32>
    %30 = tpu.reciprocal %29 {approx = true} : vector<2x4x1xf32> -> vector<2x4x1xf32>
    %31 = vector.broadcast %30 : vector<2x4x1xf32> to vector<2x4x4xf32>
    %32 = arith.mulf %27, %31 : vector<2x4x4xf32>
    %33 = arith.addf %13, %32 : vector<2x4x4xf32>
    %cst_13 = arith.constant dense<0.000000e+00> : vector<2x4x64xf32>
    %34 = tpu.matmul %33, %0, %cst_13 {dimension_numbers = #tpu.dot_dimension_numbers<[2], [1], [1], [2], [0, 0, 0, 1, 1, 2], [0], [0]>} : vector<2x4x4xf32>, vector<2x4x64xf32>, vector<2x4x64xf32> -> vector<2x4x64xf32>
    %35 = arith.addf %0, %34 : vector<2x4x64xf32>
    %36 = vector.shape_cast %35 : vector<2x4x64xf32> to vector<2x256xf32>
    %c0_14 = arith.constant 0 : index
    %c0_15 = arith.constant 0 : index
    %37 = vector.load %arg3[%c0_14, %c0_15] : memref<2x256xf32, #tpu.memory_space<vmem>>, vector<2x256xf32>
    tpu.vector_store %arg3[%c0_14, %c0_15], %36 {strides = array<i32>} : memref<2x256xf32, #tpu.memory_space<vmem>>, vector<2x256xf32>,
    return
  }
  func.func @transform_0(%arg0: i32) -> (i32, i32, i32) {
    %c0_i32 = arith.constant 0 : i32
    %c0_i32_0 = arith.constant 0 : i32
    %c0_i32_1 = arith.constant 0 : i32
    return %arg0, %c0_i32, %c0_i32_0 : i32, i32, i32
  }
  func.func @transform_1(%arg0: i32) -> (i32, i32, i32) {
    %c0_i32 = arith.constant 0 : i32
    %c0_i32_0 = arith.constant 0 : i32
    %c0_i32_1 = arith.constant 0 : i32
    return %arg0, %c0_i32, %c0_i32_0 : i32, i32, i32
  }
  func.func @transform_2(%arg0: i32) -> (i32, i32) {
    %c0_i32 = arith.constant 0 : i32
    %c0_i32_0 = arith.constant 0 : i32
    return %arg0, %c0_i32 : i32, i32
  }
}

</mosaic_0001>

<bundles_post_ra>
// kernel: tpu_custom_call.1
= control target key start
LH: loop header
LB: loop body
LE: loop exit
PB: predicated region body
PF: predicated region fallthrough
CT: control target
= control target key end

     0   :  { %7 = vsyncpa [#allocation3], 0  ;;  %s534_s0 = inlined_call_operand.hbm [shape: f32[2,4,64], index: 0, kind: input, shape index: {}]   ;;  %s535_s1 = inlined_call_operand.hbm [shape: f32[2,4,64], index: 1, kind: input, shape index: {}]   ;;  %s536_s2 = inlined_call_operand.hbm [shape: f32[2,256], index: 2, kind: output, shape index: {}]  }
   0x1   :  { %8 = vsyncpa [#allocation6], 0 }
   0x2   :  { %9 = vsyncpa [#allocation4], 0  ;;  %s14_s11 = sshll.u32 %s534_s0, 4  ;;  %s467_s12 = smov [#allocation2]   ;;  %s15_s11 = int_to_ptr.hbm [resolvable:$true] %s14_s11 }
   0x3   :  { %s16_s13 = sshll.u32 %s467_s12, 4  ;;  %s27_s16 = sshll.u32 %s535_s1, 4  ;;  %s17_s13 = int_to_ptr.vmem [resolvable:$true] %s16_s13  ;;  %s28_s16 = int_to_ptr.hbm [resolvable:$true] %s27_s16 }
   0x4   :  { %s468_s17 = smov 64   ;;  %s469_s18 = smov 4  }
   0x5   :  { %22 = dma.hbm_to_vmem [thread:$0]  %s15_s11, 128, %s17_s13, [#allocation3], %s468_s17, %s468_s17, %s469_s18  }
   0x6   :  { %s470_s19 = smov [#allocation5]  }
   0x7   :  { %s29_s20 = sshll.u32 %s470_s19, 4  ;;  %s30_s20 = int_to_ptr.vmem [resolvable:$true] %s29_s20 }
   0x8   :  { %35 = dma.hbm_to_vmem [thread:$0]  %s28_s16, 128, %s30_s20, [#allocation6], %s468_s17, %s468_s17, %s469_s18  }
   0x9   :  { %461 = dma.done.wait [#allocation3], 128  }
   0xa   :  { %462 = vsyncadd [#allocation3], 4294967168 }
   0xb   :  { %463 = dma.done.wait [#allocation6], 128  }
   0xc   :  { %464 = vsyncadd [#allocation6], 4294967168  ;;  %vm46_vm0 = vcmask 523264   ;;  %v499_v0 = vld [vmem:[#allocation2] sm:$0xf]  ;;  %vm95_vm9 = vcmask 27648  }
   0xd   :  { %v501_v1 = vld [vmem:[#allocation2 + $0x4] sm:$0xf]  ;;  %v118_v2 = vld [vmem:[#allocation5] sm:$0xf]  ;;  %344 = vmatpush.xpose.msk.msra.mxu0 %vm46_vm0, %v499_v0  ;;  %v119_v4 = vld [vmem:[#allocation5 + $0x4] sm:$0xf] }
   0xe   :  { %346 = vmatpush.xpose.msk.msra.mxu1 %vm46_vm0, %v501_v1  ;;  %v348_v3 = vmul.f32 -1.442695, %v118_v2  ;;  %v349_v5 = vmul.f32 -1.442695, %v119_v4  ;;  %vm234_vm10 = vcmask 1043456   ;;  %vm230_vm11 = vcmask 31744  }
   0xf   :  { %vm293_vm12 = vcmask 1047556   ;;  %s473_s0 = smov [#allocation7]   ;;  %s333_s23 = sshll.u32 %s536_s2, 4  ;;  %vm322_vm13 = vcmask 1041408   ;;  %s334_s23 = int_to_ptr.hbm [resolvable:$true] %s333_s23 }
  0x10   :  { %365 = vpow2.f32 %v348_v3  ;;  %345 = vmatmul.msk.f32.vlgmr.msra.gmra.mxu0 %vm46_vm0, %v499_v0  ;;  %s331_s1 = sshll.u32 %s473_s0, 4  ;;  %s332_s1 = int_to_ptr.vmem [resolvable:$true] %s331_s1 }
  0x11   :  { %347 = vmatmul.msk.f32.vlgmr.msra.gmra.mxu1 %vm46_vm0, %v501_v1  ;;  %367 = vpow2.f32 %v349_v5  ;;  %354 = vmatpush.msk.msrb.mxu0 %vm234_vm10, %v499_v0 }
  0x12   :  { %356 = vmatpush.msk.msrb.mxu1 %vm234_vm10, %v501_v1 }
  0x16   :  { %v366_v6 = vpop.eup %365 }
  0x17   :  { %v368_v7 = vpop.eup %367  ;;  %v126_v8 = vadd.f32 1.0, %v366_v6 }
  0x18   :  { %v127_v9 = vadd.f32 1.0, %v368_v7 }
  0x19   :  { %369 = vrcp.f32 %v126_v8  ;;  %vm133_vm1 = vweird.f32 %v126_v8  ;;  %v139_v13 = vand.u32 2147483648, %v126_v8  ;;  %v137_v16 = vand.u32 2147483647, %v126_v8 }
  0x1a   :  { %371 = vrcp.f32 %v127_v9  ;;  %v154_v17 = vand.u32 2147483648, %v127_v9  ;;  %vm148_vm3 = vweird.f32 %v127_v9  ;;  %v152_v19 = vand.u32 2147483647, %v127_v9 }
  0x1b   :  { %v140_v21 = vor.u32 1.1754944e-38, %v139_v13  ;;  %vm138_vm6 = vcmp.eq.f32.partialorder %v137_v16, 8.507059e+37 }
  0x1c   :  { %v155_v24 = vor.u32 1.1754944e-38, %v154_v17  ;;  %vm153_vm8 = vcmp.eq.f32.partialorder %v152_v19, 8.507059e+37 }
  0x1f   :  { %v370_v10 = vpop.eup %369 }
  0x20   :  { %v372_v11 = vpop.eup %371  ;;  %v129_v12 = vmul.f32 %v370_v10, %v126_v8  ;;  %vm134_vm2 = vweird.f32 %v370_v10 }
  0x21   :  { %v144_v14 = vmul.f32 %v372_v11, %v127_v9  ;;  %vm149_vm4 = vweird.f32 %v372_v11  ;;  %vm135_vm5 = vmor %vm133_vm1, %vm134_vm2 }
  0x22   :  { %v130_v15 = vsub.f32 1.0, %v129_v12  ;;  %vm150_vm7 = vmor %vm148_vm3, %vm149_vm4 }
  0x23   :  { %v145_v18 = vsub.f32 1.0, %v144_v14  ;;  %v471_v14 = vmov 1983009808  }
  0x24   :  { %v131_v20 = vmul.f32 %v370_v10, %v130_v15  ;;  %v284_v15 = vunpack.c.l.s4 %v471_v14 }
  0x25   :  { %v146_v22 = vmul.f32 %v372_v11, %v145_v18  ;;  %v472_v18 = vmov 1934713408  }
  0x26   :  { %v132_v23 = vadd.f32 %v370_v10, %v131_v20  ;;  %v285_v16 = vunpack.c.0.s8 %v284_v15  ;;  %v298_v19 = vunpack.c.l.s4 %v472_v18 }
  0x27   :  { %v147_v25 = vadd.f32 %v372_v11, %v146_v22 }
  0x28   :  { %v136_v26 = vsel %vm135_vm5, %v370_v10, %v132_v23 }
  0x29   :  { %v141_v27 = vsel %vm138_vm6, %v140_v21, %v136_v26  ;;  %v151_v28 = vsel %vm150_vm7, %v372_v11, %v147_v25  ;;  %v299_v25 = vunpack.c.0.s8 %v298_v19 }
  0x2a   :  { %350 = vmatpush.xpose.msk.msra.mxu2 %vm46_vm0, %v141_v27  ;;  %v156_v29 = vsel %vm153_vm8, %v155_v24, %v151_v28 }
  0x2b   :  { %352 = vmatpush.xpose.msk.msra.mxu3 %vm46_vm0, %v156_v29 }
  0x2d   :  { %351 = vmatmul.msk.f32.vlgmr.msra.gmra.mxu2 %vm46_vm0, %v141_v27 }
  0x2e   :  { %353 = vmatmul.msk.f32.vlgmr.msra.gmra.mxu3 %vm46_vm0, %v156_v29 }
  0x8d   :  { %v67_v30 = vpop.f32.mrf.mxu0 }
  0x8e   :  { %v90_v31 = vpop.f32.mrf.mxu1  ;;  %v93_v32 = vmul.f32 0.025253814, %v67_v30 }
  0x8f   :  { %v94_v33 = vmul.f32 0.025253814, %v90_v31 }
  0x90   :  { %v96_v35 = vsel %vm95_vm9, %v93_v32, -inf }
  0x91   :  { %v99_v34 = vsel %vm95_vm9, %v94_v33, -inf  ;;  %97 = vmax.xlane.f32.xlu0 %v96_v35 }
  0x92   :  { %100 = vmax.xlane.f32.xlu1 %v99_v34 }
  0xb0   :  { %v178_v36 = vpop.f32.mrf.mxu2 }
  0xb1   :  { %v204_v37 = vmul.f32 0.025253814, %v178_v36  ;;  %v201_v38 = vpop.f32.mrf.mxu3 }
  0xb2   :  { %v205_v39 = vmul.f32 0.025253814, %v201_v38 }
  0xb3   :  { %v206_v40 = vsel %vm95_vm9, %v204_v37, -inf }
  0xb4   :  { %v209_v41 = vsel %vm95_vm9, %v205_v39, -inf  ;;  %207 = vmax.xlane.f32.xlu0 %v206_v40 }
  0xb5   :  { %210 = vmax.xlane.f32.xlu1 %v209_v41 }
 0x104   :  { %v98_v43 = vpop.xlane.xlu0 %97 }
 0x105   :  { %v101_v42 = vpop.xlane.xlu1 %100  ;;  %v102_v45 = vsub.f32 %v93_v32, %v98_v43 }
 0x106   :  { %v103_v44 = vsub.f32 %v94_v33, %v101_v42 }
 0x107   :  { %v104_v47 = vmul.f32 1.442695, %v102_v45 }
 0x108   :  { %v106_v46 = vmul.f32 1.442695, %v103_v44 }
 0x10a   :  { %373 = vpow2.f32 %v106_v46 }
 0x10b   :  { %375 = vpow2.f32 %v104_v47 }
 0x110   :  { %v374_v48 = vpop.eup %373 }
 0x111   :  { %v376_v49 = vpop.eup %375  ;;  %v111_v50 = vsel %vm95_vm9, %v374_v48, 0.0 }
 0x112   :  { %112 = vadd.xlane.f32.xlu0 %v111_v50  ;;  %v108_v51 = vsel %vm95_vm9, %v376_v49, 0.0 }
 0x113   :  { %109 = vadd.xlane.f32.xlu2 %v108_v51 }
 0x127   :  { %v208_v52 = vpop.xlane.xlu0 %207 }
 0x128   :  { %v211_v53 = vpop.xlane.xlu1 %210  ;;  %v212_v54 = vsub.f32 %v204_v37, %v208_v52 }
 0x129   :  { %v213_v55 = vsub.f32 %v205_v39, %v211_v53 }
 0x12a   :  { %v214_v56 = vmul.f32 1.442695, %v212_v54 }
 0x12b   :  { %v216_v57 = vmul.f32 1.442695, %v213_v55 }
 0x12c   :  { %377 = vpow2.f32 %v214_v56 }
 0x12d   :  { %379 = vpow2.f32 %v216_v57 }
 0x132   :  { %v378_v58 = vpop.eup %377 }
 0x133   :  { %v380_v59 = vpop.eup %379  ;;  %v218_v60 = vsel %vm95_vm9, %v378_v58, 0.0 }
 0x134   :  { %v221_v61 = vsel %vm95_vm9, %v380_v59, 0.0  ;;  %219 = vadd.xlane.f32.xlu2 %v218_v60 }
 0x135   :  { %222 = vadd.xlane.f32.xlu1 %v221_v61 }
 0x185   :  { %v113_v63 = vpop.xlane.xlu0 %112 }
 0x186   :  { %v110_v62 = vpop.xlane.xlu2 %109 }
 0x187   :  { %381 = vrcp.f32 %v110_v62 }
 0x188   :  { %383 = vrcp.f32 %v113_v63 }
 0x18d   :  { %v382_v4 = vpop.eup %381 }
 0x18e   :  { %v384_v5 = vpop.eup %383  ;;  %v116_v8 = vmul.f32 %v382_v4, %v376_v49 }
 0x18f   :  { %v117_v10 = vmul.f32 %v384_v5, %v374_v48 }
 0x1a7   :  { %v220_v2 = vpop.xlane.xlu2 %219 }
 0x1a8   :  { %v223_v3 = vpop.xlane.xlu1 %222  ;;  %385 = vrcp.f32 %v220_v2 }
 0x1a9   :  { %387 = vrcp.f32 %v223_v3 }
 0x1ae   :  { %v386_v6 = vpop.eup %385 }
 0x1af   :  { %v388_v7 = vpop.eup %387  ;;  %v226_v9 = vmul.f32 %v386_v6, %v378_v58 }
 0x1b0   :  { %v227_v11 = vmul.f32 %v388_v7, %v380_v59 }
 0x1b1   :  { %v228_v12 = vadd.f32 %v226_v9, %v116_v8 }
 0x1b2   :  { %v229_v13 = vadd.f32 %v227_v11, %v117_v10 }
 0x1b3   :  { %355 = vmatmul.msk.f32.vlgmr.msrb.gmra.mxu0 %vm230_vm11, %v228_v12 }
 0x1b4   :  { %357 = vmatmul.msk.f32.vlgmr.msrb.gmra.mxu1 %vm230_vm11, %v229_v13 }
 0x230   :  { %v254_v17 = vpop.f32.mrf.mxu0 }
 0x231   :  { %v282_v20 = vadd.f32 %v254_v17, %v499_v0  ;;  %v279_v21 = vpop.f32.mrf.mxu1 }
 0x232   :  { %v287_v22 = vadd.f32 %v279_v21, %v501_v1 }
 0x233   :  { %v286_v23 = vperm.slane %v282_v20, %v285_v16 }
 0x234   :  { %v291_v24 = vperm.slane %v287_v22, %v285_v16 }
 0x235   :  { %v295_v26 = vrot.slane %v286_v23, 4 }
 0x236   :  { %v292_v27 = vrot.slane %v291_v24, 4 }
 0x237   :  { %v296_v28 = vsel %vm293_vm12, %v291_v24, %v295_v26 }
 0x238   :  { %v304_v29 = vperm.slane %v296_v28, %v299_v25  ;;  %v294_v30 = vsel %vm293_vm12, %v292_v27, %v286_v23 }
 0x239   :  { %v300_v31 = vperm.slane %v294_v30, %v299_v25 }
 0x23a   :  { %v307_v32 = vrot.slane %v304_v29, 4 }
 0x23b   :  { %v305_v33 = vrot.slane %v300_v31, 4 }
 0x23c   :  { %v308_v34 = vsel %vm293_vm12, 0.0, %v307_v32 }
 0x23d   :  { %314 = vrot.lane.b32.xlu2 %v308_v34, %s468_s17  ;;  %v306_v35 = vsel %vm293_vm12, 0.0, %v305_v33 }
 0x23e   :  { %310 = vrot.lane.b32.xlu0 %v306_v35, %s468_s17 }
 0x297   :  { %v315_v0 = vpop.permute.xlu2 %314 }
 0x298   :  { %v318_v1 = vsel %vm46_vm0, %v304_v29, %v315_v0 }
 0x299   :  { %v321_v36 = vrot.slane %v318_v1, 6 }
 0x2b0   :  { %v311_v37 = vpop.permute.xlu0 %310 }
 0x2b1   :  { %v317_v38 = vsel %vm46_vm0, %v300_v31, %v311_v37 }
 0x2b2   :  { %v323_v39 = vsel %vm322_vm13, %v317_v38, %v321_v36 }
 0x2b3   :  { %325 = vst [vmem:[#allocation7] sm:$0xf] %v323_v39 }
 0x2b4   :  { %336 = dma.vmem_to_hbm [thread:$0]  %s332_s1, 64, %s334_s23, [#allocation4]  }
 0x2b5   :  { %465 = dma.done.wait [#allocation4], 64  }
 0x2b6   :  { %466 = vsyncadd [#allocation4], 4294967232 }
 0x2b7   :  { %341 = vsyncpa [#allocation3], 1 }
 0x2b8   :  { %342 = vsyncpa [#allocation6], 1 }
 0x2b9   :  { %343 = vsyncpa [#allocation4], 1 }

</bundles_post_ra>
